<compile_context>
chip_gen: v6e
topology: v6e:2x2x1
jax: 0.10.0
libtpu: 0.0.40
codegen_flags: <defaults>
</compile_context>

<pallas_src>
import functools
import math

import jax
import jax.numpy as jnp
from jax.experimental import pallas as pl
from jax.experimental.pallas import tpu as pltpu

_NEG_BIG = -1e30                      # finite "minus infinity"
_GELU_C = math.sqrt(2.0 / math.pi)


def _layernorm(x, scale, shift, eps=1e-5):
    mean = jnp.mean(x, axis=-1, keepdims=True)
    var = jnp.mean(jnp.square(x - mean), axis=-1, keepdims=True)  # unbiased=False
    return (x - mean) * jax.lax.rsqrt(var + eps) * scale + shift


def _gelu_tanh(x):
    return 0.5 * x * (1.0 + jnp.tanh(_GELU_C * (x + 0.044715 * x * x * x)))


# ----------------------------------------------------------------------------
# Kernel A: LayerNorm1 + fused Q|K|V projection (done once per token tile).
# ----------------------------------------------------------------------------
def _ln_qkv_kernel(x_ref, ln1_s_ref, ln1_b_ref, wqkv_ref, qkv_ref, *, mxu_dtype):
    xn = _layernorm(x_ref[0].astype(jnp.float32), ln1_s_ref[...], ln1_b_ref[...])
    qkv_ref[0] = jnp.dot(xn.astype(mxu_dtype), wqkv_ref[...],
                         preferred_element_type=jnp.float32).astype(qkv_ref.dtype)


# ----------------------------------------------------------------------------
# Kernel B: flash attention (all heads fused) + out-proj + LN2 + FFN epilogue.
# ----------------------------------------------------------------------------
def _flash_ffn_kernel(
    x_ref, q_ref, k_ref, v_ref,
    wo_ref, bo_ref, ln2_s_ref, ln2_b_ref, w1_ref, b1_ref, w2_ref, b2_ref,
    o_ref,
    m_scr, l_scr, acc_scr,
    *, num_heads, head_dim, block_q, block_k, mxu_dtype):
    qi = pl.program_id(1)
    ki = pl.program_id(2)
    nk = pl.num_programs(2)

    # --- per-(batch, q-tile) init: reset the flash state.
    @pl.when(ki == 0)
    def _init():
        m_scr[...] = jnp.full(m_scr.shape, _NEG_BIG, m_scr.dtype)
        l_scr[...] = jnp.zeros(l_scr.shape, l_scr.dtype)
        acc_scr[...] = jnp.zeros(acc_scr.shape, acc_scr.dtype)

    # --- online-softmax update; kv blocks entirely above the diagonal are
    #     skipped (their DMA is also suppressed by the clamped index_map).
    @pl.when(ki * block_k <= qi * block_q + (block_q - 1))
    def _attend():
        qm = q_ref[0].astype(mxu_dtype)              # (TQ, d); scale folded in W_q
        km = k_ref[0].astype(mxu_dtype)              # (TK, d)
        vm = v_ref[0].astype(mxu_dtype)              # (TK, d)

        # Causal additive bias, built ONCE per kv step and shared by all heads.
        row = qi * block_q + jax.lax.broadcasted_iota(
            jnp.int32, (block_q, block_k), 0)
        col = ki * block_k + jax.lax.broadcasted_iota(
            jnp.int32, (block_q, block_k), 1)
        bias = jnp.where(col <= row, 0.0, _NEG_BIG).astype(jnp.float32)

        for h in range(num_heads):                   # static, unrolled
            hs = slice(h * head_dim, (h + 1) * head_dim)
            s = jax.lax.dot_general(qm[:, hs], km[:, hs],
                                    (((1,), (1,)), ((), ())),
                                    preferred_element_type=jnp.float32)
            s = s + bias                             # (TQ, TK)
            m_prev = m_scr[h]                        # (TQ, 1)
            m_new = jnp.maximum(m_prev, jnp.max(s, axis=-1, keepdims=True))
            alpha = jnp.exp(m_prev - m_new)
            p = jnp.exp(s - m_new)
            l_scr[h] = alpha * l_scr[h] + jnp.sum(p, axis=-1, keepdims=True)
            acc_scr[:, hs] = alpha * acc_scr[:, hs] + jnp.dot(
                p.astype(mxu_dtype), vm[:, hs], preferred_element_type=jnp.float32)
            m_scr[h] = m_new

    # --- epilogue: normalize, ONE full-K out-proj matmul, residual, LN2, FFN.
    @pl.when(ki == nk - 1)
    def _finalize():
        for h in range(num_heads):
            hs = slice(h * head_dim, (h + 1) * head_dim)
            acc_scr[:, hs] = acc_scr[:, hs] * pl.reciprocal(l_scr[h], approx=False)
        ctx = acc_scr[...]                                           # (TQ, d)
        attn = jnp.dot(ctx.astype(mxu_dtype), wo_ref[...],
                       preferred_element_type=jnp.float32) + bo_ref[...]
        h1 = x_ref[0].astype(jnp.float32) + attn                     # residual 1
        h1n = _layernorm(h1, ln2_s_ref[...], ln2_b_ref[...])
        ff = jnp.dot(h1n.astype(mxu_dtype), w1_ref[...],
                     preferred_element_type=jnp.float32) + b1_ref[...]
        ff = _gelu_tanh(ff)
        ff = jnp.dot(ff.astype(mxu_dtype), w2_ref[...],
                     preferred_element_type=jnp.float32) + b2_ref[...]
        o_ref[0] = (h1 + ff).astype(o_ref.dtype)                     # residual 2


def transformer_block(x, ln1_scale, ln1_shift, w_qkv, w_o, b_o,
                      ln2_scale, ln2_shift, w1, b1, w2, b2,
                      *, num_heads, block_q=128, block_k=128,
                      mxu_dtype=jnp.bfloat16):
    """x: (B, T, d); w_qkv: (d, 3d) fused Q|K|V (pre-transposed, y = x @ W)."""
    B, T, d = x.shape
    assert d % num_heads == 0
    head_dim = d // num_heads
    block_q = min(block_q, T)
    block_k = min(block_k, T)
    assert T % block_q == 0 and T % block_k == 0
    d_ff = w1.shape[-1]
    f32 = jnp.float32

    # Non-matmul parameters stay f32 (biases / LN affine), shaped (1, width).
    ln1_scale = jnp.asarray(ln1_scale, f32).reshape(1, d)
    ln1_shift = jnp.asarray(ln1_shift, f32).reshape(1, d)
    ln2_scale = jnp.asarray(ln2_scale, f32).reshape(1, d)
    ln2_shift = jnp.asarray(ln2_shift, f32).reshape(1, d)
    b_o = jnp.asarray(b_o, f32).reshape(1, d)
    b1 = jnp.asarray(b1, f32).reshape(1, d_ff)
    b2 = jnp.asarray(b2, f32).reshape(1, d)

    # Fold 1/sqrt(head_dim) into W_q (host side, zero kernel cost); cast all
    # matmul weights to the MXU input dtype (accumulation stays f32).
    scale = 1.0 / math.sqrt(head_dim)
    w_qkv3 = jnp.concatenate([w_qkv[:, :d] * scale, w_qkv[:, d:]], axis=1)
    w_qkv3 = w_qkv3.astype(mxu_dtype)
    w_o_c = jnp.asarray(w_o, mxu_dtype)
    w1_c = jnp.asarray(w1, mxu_dtype)
    w2_c = jnp.asarray(w2, mxu_dtype)

    def rep(a):
        nd = a.ndim
        return pl.BlockSpec(a.shape, lambda *_: (0,) * nd)

    n_q = T // block_q
    n_k = T // block_k
    itemsize = jnp.dtype(x.dtype).itemsize
    vmem_limit = 40 * 1024 * 1024            # <= 40 MiB: leaves headroom on v7x

    # ------------------------- Kernel A: LN1 + QKV -------------------------
    qkv = pl.pallas_call(
        functools.partial(_ln_qkv_kernel, mxu_dtype=mxu_dtype),
        out_shape=jax.ShapeDtypeStruct((B, T, 3 * d), x.dtype),
        grid_spec=pltpu.PrefetchScalarGridSpec(
            num_scalar_prefetch=0,
            grid=(B, n_q),
            in_specs=[
                pl.BlockSpec((1, block_q, d), lambda b, t: (b, t, 0)),
                rep(ln1_scale), rep(ln1_shift), rep(w_qkv3),
            ],
            out_specs=pl.BlockSpec((1, block_q, 3 * d), lambda b, t: (b, t, 0))),
        compiler_params=pltpu.CompilerParams(
            dimension_semantics=("parallel", "parallel"),
            vmem_limit_bytes=vmem_limit),
        cost_estimate=pl.CostEstimate(
            flops=int(2 * B * T * d * 3 * d),
            transcendentals=int(B * T),
            bytes_accessed=int(4 * x.size * itemsize
                               + w_qkv3.size * jnp.dtype(mxu_dtype).itemsize)),
    )(x, ln1_scale, ln1_shift, w_qkv3)

    # ------------- Kernel B: flash attention + out-proj + LN2 + FFN --------
    def last_kv(qi):                                    # last causally-needed kv block
        return (qi * block_q + block_q - 1) // block_k

    q_map = lambda b, qi, ki: (b, qi, 0)                          # Q cols  0:d
    k_map = lambda b, qi, ki: (b, jnp.minimum(ki, last_kv(qi)), 1)  # K cols d:2d
    v_map = lambda b, qi, ki: (b, jnp.minimum(ki, last_kv(qi)), 2)  # V cols 2d:3d

    kernel = functools.partial(
        _flash_ffn_kernel, num_heads=num_heads, head_dim=head_dim,
        block_q=block_q, block_k=block_k, mxu_dtype=mxu_dtype)

    flops = int(4 * B * T * T * d            # scores + p@v (causal ~halves this)
                + 2 * B * T * d * d          # output projection
                + 4 * B * T * d * d_ff)      # FFN
    transcendentals = int(B * num_heads * T * T + B * T * d_ff + 2 * B * T)
    bytes_accessed = int(
        (x.size + qkv.size + x.size) * itemsize
        + (w_o_c.size + w1_c.size + w2_c.size) * jnp.dtype(mxu_dtype).itemsize)

    out = pl.pallas_call(
        kernel,
        out_shape=jax.ShapeDtypeStruct((B, T, d), x.dtype),
        grid_spec=pltpu.PrefetchScalarGridSpec(
            num_scalar_prefetch=0,
            grid=(B, n_q, n_k),
            in_specs=[
                pl.BlockSpec((1, block_q, d), q_map),       # x (residual tile)
                pl.BlockSpec((1, block_q, d), q_map),       # Q tile
                pl.BlockSpec((1, block_k, d), k_map),       # K tile (clamped)
                pl.BlockSpec((1, block_k, d), v_map),       # V tile (clamped)
                rep(w_o_c), rep(b_o), rep(ln2_scale), rep(ln2_shift),
                rep(w1_c), rep(b1), rep(w2_c), rep(b2),
            ],
            out_specs=pl.BlockSpec((1, block_q, d), q_map),
            scratch_shapes=[
                pltpu.VMEM((num_heads, block_q, 1), jnp.float32),   # m
                pltpu.VMEM((num_heads, block_q, 1), jnp.float32),   # l
                pltpu.VMEM((block_q, d), jnp.float32),              # ctx accumulator
            ]),
        compiler_params=pltpu.CompilerParams(
            dimension_semantics=("parallel", "parallel", "arbitrary"),
            vmem_limit_bytes=vmem_limit),
        cost_estimate=pl.CostEstimate(
            flops=flops, transcendentals=transcendentals,
            bytes_accessed=bytes_accessed),
    )(x, qkv, qkv, qkv, w_o_c, b_o, ln2_scale, ln2_shift, w1_c, b1, w2_c, b2)
    return out


def reference_transformer_block(x, ln1_scale, ln1_shift, w_qkv, w_o, b_o,
                                ln2_scale, ln2_shift, w1, b1, w2, b2,
                                *, num_heads):
    """Pure-JAX reference matching the PyTorch TransformerBlock (eval mode)."""
    B, T, d = x.shape
    hd = d // num_heads

    def ln(y, s, b):
        mean = y.mean(-1, keepdims=True)
        var = ((y - mean) ** 2).mean(-1, keepdims=True)
        return (y - mean) / jnp.sqrt(var + 1e-5) * s + b

    h = ln(x, ln1_scale, ln1_shift)
    qkv = h @ w_qkv
    q, k, v = qkv[..., :d], qkv[..., d:2 * d], qkv[..., 2 * d:]

    def split(y):
        return y.reshape(B, T, num_heads, hd).transpose(0, 2, 1, 3)

    q, k, v = split(q), split(k), split(v)
    s = jnp.einsum('bhqd,bhkd->bhqk', q, k)
    mask = jnp.triu(jnp.ones((T, T), dtype=bool), k=1)
    s = jnp.where(mask[None, None], -jnp.inf, s)
    w = jax.nn.softmax(s / hd ** 0.5, axis=-1)
    ctx = jnp.einsum('bhqk,bhkd->bhqd', w, v).transpose(0, 2, 1, 3).reshape(B, T, d)
    attn = ctx @ w_o + b_o
    x1 = x + attn
    h2 = ln(x1, ln2_scale, ln2_shift)
    ff = h2 @ w1 + b1
    ff = 0.5 * ff * (1.0 + jnp.tanh(_GELU_C * (ff + 0.044715 * ff ** 3)))
    ff = ff @ w2 + b2
    return x1 + ff


if __name__ == "__main__":
    # Small GPT-style config; emb_dim=128 keeps the output lane-dense.
    B = 2
    T = 16            # context_length
    d = 128           # emb_dim
    H = 4             # n_heads  (head_dim = 32)
    d_ff = 4 * d

    key = jax.random.PRNGKey(0)
    keys = jax.random.split(key, 14)

    x = jax.random.normal(keys[0], (B, T, d), dtype=jnp.float32)

    # Linear weights stored pre-transposed as (in, out): y = x @ W + b.
    wq = 0.08 * jax.random.normal(keys[1], (d, d), dtype=jnp.float32)
    wk = 0.08 * jax.random.normal(keys[2], (d, d), dtype=jnp.float32)
    wv = 0.08 * jax.random.normal(keys[3], (d, d), dtype=jnp.float32)
    w_qkv = jnp.concatenate([wq, wk, wv], axis=1)                # fused (d, 3d)
    w_o = 0.08 * jax.random.normal(keys[4], (d, d), dtype=jnp.float32)
    b_o = 0.05 * jax.random.normal(keys[5], (1, d), dtype=jnp.float32)
    w1 = 0.08 * jax.random.normal(keys[6], (d, d_ff), dtype=jnp.float32)
    b1 = 0.05 * jax.random.normal(keys[7], (1, d_ff), dtype=jnp.float32)
    w2 = 0.08 * jax.random.normal(keys[8], (d_ff, d), dtype=jnp.float32)
    b2 = 0.05 * jax.random.normal(keys[9], (1, d), dtype=jnp.float32)
    ln1_scale = 1.0 + 0.1 * jax.random.normal(keys[10], (1, d), dtype=jnp.float32)
    ln1_shift = 0.1 * jax.random.normal(keys[11], (1, d), dtype=jnp.float32)
    ln2_scale = 1.0 + 0.1 * jax.random.normal(keys[12], (1, d), dtype=jnp.float32)
    ln2_shift = 0.1 * jax.random.normal(keys[13], (1, d), dtype=jnp.float32)

    args = (x, ln1_scale, ln1_shift, w_qkv, w_o, b_o,
            ln2_scale, ln2_shift, w1, b1, w2, b2)
    ref = reference_transformer_block(*args, num_heads=H)

    # Run 1: exact MXU dtype (f32 operands) with tiny 8x8 tiles so the test
    # exercises multi-step online softmax, kv-index clamping and causal block
    # skipping (grid = (2, 2, 2)); tight tolerance.
    out = transformer_block(*args, num_heads=H, block_q=8, block_k=8,
                            mxu_dtype=jnp.float32)
    out = jax.block_until_ready(out)
    assert out.shape == (B, T, d)
    max_err = float(jnp.max(jnp.abs(out - ref)))
    assert jnp.allclose(out, ref, atol=1e-2, rtol=1e-2), max_err

    # Run 2: production MXU path — bf16 operands / f32 accumulation, default
    # (lane-dense) tiles; looser tolerance appropriate for bf16 inputs.
    out_bf16 = transformer_block(*args, num_heads=H, mxu_dtype=jnp.bfloat16)
    out_bf16 = jax.block_until_ready(out_bf16)
    max_err_bf16 = float(jnp.max(jnp.abs(out_bf16 - ref)))
    assert jnp.allclose(out_bf16, ref, atol=1e-1, rtol=1e-1), max_err_bf16

    print("KERNEL_OK")
</pallas_src>

<mosaic_0001>
module attributes {stable_mosaic.version = 11 : i64} {
  func.func @_ln_qkv_kernel(%arg0: i32, %arg1: i32, %arg2: memref<1x8x128xf32, #tpu.memory_space<vmem>>, %arg3: memref<1x128xf32, #tpu.memory_space<vmem>>, %arg4: memref<1x128xf32, #tpu.memory_space<vmem>>, %arg5: memref<128x384xf32, #tpu.memory_space<vmem>>, %arg6: memref<1x8x384xf32, #tpu.memory_space<vmem>>) attributes {dimension_semantics = [#tpu.dimension_semantics<parallel>, #tpu.dimension_semantics<parallel>], iteration_bounds = array<i64: 2, 2>, scalar_prefetch = 0 : i64, scratch_operands = 0 : i64, tpu.core_type = #tpu.core_type<tc>, window_params = [{transform_indices = @transform_0, window_bounds = array<i64: 1, 8, 128>}, {pipeline_mode = #tpu.pipeline_mode<synchronous>, transform_indices = @transform_1, window_bounds = array<i64: 1, 128>}, {pipeline_mode = #tpu.pipeline_mode<synchronous>, transform_indices = @transform_2, window_bounds = array<i64: 1, 128>}, {pipeline_mode = #tpu.pipeline_mode<synchronous>, transform_indices = @transform_3, window_bounds = array<i64: 128, 384>}, {transform_indices = @transform_4, window_bounds = array<i64: 1, 8, 384>}]} {
    %c0 = arith.constant 0 : index
    %c0_0 = arith.constant 0 : index
    %c0_1 = arith.constant 0 : index
    %0 = vector.load %arg2[%c0, %c0_0, %c0_1] : memref<1x8x128xf32, #tpu.memory_space<vmem>>, vector<1x8x128xf32>
    %1 = vector.shape_cast %0 : vector<1x8x128xf32> to vector<8x128xf32>
    %c0_2 = arith.constant 0 : index
    %c0_3 = arith.constant 0 : index
    %2 = vector.load %arg3[%c0_2, %c0_3] : memref<1x128xf32, #tpu.memory_space<vmem>>, vector<1x128xf32>
    %c0_4 = arith.constant 0 : index
    %c0_5 = arith.constant 0 : index
    %3 = vector.load %arg4[%c0_4, %c0_5] : memref<1x128xf32, #tpu.memory_space<vmem>>, vector<1x128xf32>
    %cst = arith.constant dense<0.000000e+00> : vector<8xf32>
    %4 = vector.multi_reduction <add>, %1, %cst [1] : vector<8x128xf32> to vector<8xf32>
    %5 = vector.shape_cast %4 : vector<8xf32> to vector<8x1xf32>
    %cst_6 = arith.constant 1.280000e+02 : f32
    %6 = vector.broadcast %cst_6 : f32 to vector<8x1xf32>
    %7 = arith.divf %5, %6 : vector<8x1xf32>
    %8 = vector.broadcast %7 : vector<8x1xf32> to vector<8x128xf32>
    %9 = arith.subf %1, %8 : vector<8x128xf32>
    %10 = arith.mulf %9, %9 : vector<8x128xf32>
    %cst_7 = arith.constant dense<0.000000e+00> : vector<8xf32>
    %11 = vector.multi_reduction <add>, %10, %cst_7 [1] : vector<8x128xf32> to vector<8xf32>
    %12 = vector.shape_cast %11 : vector<8xf32> to vector<8x1xf32>
    %cst_8 = arith.constant 1.280000e+02 : f32
    %13 = vector.broadcast %cst_8 : f32 to vector<8x1xf32>
    %14 = arith.divf %12, %13 : vector<8x1xf32>
    %15 = vector.broadcast %7 : vector<8x1xf32> to vector<8x128xf32>
    %16 = arith.subf %1, %15 : vector<8x128xf32>
    %cst_9 = arith.constant 9.99999974E-6 : f32
    %17 = vector.broadcast %cst_9 : f32 to vector<8x1xf32>
    %18 = arith.addf %14, %17 : vector<8x1xf32>
    %19 = math.rsqrt %18 : vector<8x1xf32>
    %20 = vector.broadcast %19 : vector<8x1xf32> to vector<8x128xf32>
    %21 = arith.mulf %16, %20 : vector<8x128xf32>
    %22 = vector.broadcast %2 : vector<1x128xf32> to vector<8x128xf32>
    %23 = arith.mulf %21, %22 : vector<8x128xf32>
    %24 = vector.broadcast %3 : vector<1x128xf32> to vector<8x128xf32>
    %25 = arith.addf %23, %24 : vector<8x128xf32>
    %c0_10 = arith.constant 0 : index
    %c0_11 = arith.constant 0 : index
    %26 = vector.load %arg5[%c0_10, %c0_11] : memref<128x384xf32, #tpu.memory_space<vmem>>, vector<128x384xf32>
    %cst_12 = arith.constant dense<0.000000e+00> : vector<8x384xf32>
    %27 = tpu.matmul %25, %26, %cst_12 {dimension_numbers = #tpu.dot_dimension_numbers<[1], [0], [0], [1], [0, 0, 1, 1], [], []>} : vector<8x128xf32>, vector<128x384xf32>, vector<8x384xf32> -> vector<8x384xf32>
    %c0_13 = arith.constant 0 : index
    %c0_14 = arith.constant 0 : index
    %c0_15 = arith.constant 0 : index
    %28 = vector.load %arg6[%c0_13, %c0_14, %c0_15] : memref<1x8x384xf32, #tpu.memory_space<vmem>>, vector<1x8x384xf32>
    %29 = vector.shape_cast %28 : vector<1x8x384xf32> to vector<8x384xf32>
    %30 = vector.shape_cast %27 : vector<8x384xf32> to vector<1x8x384xf32>
    tpu.vector_store %arg6[%c0_13, %c0_14, %c0_15], %30 {strides = array<i32>} : memref<1x8x384xf32, #tpu.memory_space<vmem>>, vector<1x8x384xf32>,
    return
  }
  func.func @transform_0(%arg0: i32, %arg1: i32) -> (i32, i32, i32) {
    %c0_i32 = arith.constant 0 : i32
    %c0_i32_0 = arith.constant 0 : i32
    return %arg0, %arg1, %c0_i32 : i32, i32, i32
  }
  func.func @transform_1(%arg0: i32, %arg1: i32) -> (i32, i32) {
    %c0_i32 = arith.constant 0 : i32
    %c0_i32_0 = arith.constant 0 : i32
    %c0_i32_1 = arith.constant 0 : i32
    return %c0_i32, %c0_i32_0 : i32, i32
  }
  func.func @transform_2(%arg0: i32, %arg1: i32) -> (i32, i32) {
    %c0_i32 = arith.constant 0 : i32
    %c0_i32_0 = arith.constant 0 : i32
    %c0_i32_1 = arith.constant 0 : i32
    return %c0_i32, %c0_i32_0 : i32, i32
  }
  func.func @transform_3(%arg0: i32, %arg1: i32) -> (i32, i32) {
    %c0_i32 = arith.constant 0 : i32
    %c0_i32_0 = arith.constant 0 : i32
    %c0_i32_1 = arith.constant 0 : i32
    return %c0_i32, %c0_i32_0 : i32, i32
  }
  func.func @transform_4(%arg0: i32, %arg1: i32) -> (i32, i32, i32) {
    %c0_i32 = arith.constant 0 : i32
    %c0_i32_0 = arith.constant 0 : i32
    return %arg0, %arg1, %c0_i32 : i32, i32, i32
  }
}

</mosaic_0001>

<bundles_post_ra>
// kernel: tpu_custom_call.1
= control target key start
LH: loop header
LB: loop body
LE: loop exit
PB: predicated region body
PF: predicated region fallthrough
CT: control target
= control target key end

     0   :  { %s1159_s0 = inlined_call_operand.hbm [shape: f32[2,16,128], index: 0, kind: input, shape index: {}]   ;;  %s1160_s1 = inlined_call_operand.vmem [shape: f32[1,128], index: 1, kind: input, shape index: {}]   ;;  %s1161_s2 = inlined_call_operand.vmem [shape: f32[1,128], index: 2, kind: input, shape index: {}]   ;;  %s1162_s3 = inlined_call_operand.hbm [shape: f32[128,384], index: 3, kind: input, shape index: {}]   ;;  %s1163_s4 = inlined_call_operand.hbm [shape: f32[2,16,384], index: 4, kind: output, shape index: {}]  }
   0x1   :  { %1171 = sst [smem:[#allocation15_spill]] %s1162_s3 }
   0x2   :  { %1172 = sst [smem:[#allocation16_spill]] %s1163_s4 }
   0x3   :  { %9 = vsyncpa [#allocation3], 0 }
   0x4   :  { %11 = vsyncpa [#allocation3 + $0x1], 0 }
   0x5   :  { %12 = vsyncpa [#allocation6], 0 }
   0x6   :  { %13 = vsyncpa [#allocation4], 0 }
   0x7   :  { %15 = vsyncpa [#allocation4 + $0x1], 0  ;;  %s934_s15 = smov 0   ;;  %s936_s16 = smov 0  }
   0x8   :  { %s938_s17 = smov 0   ;;  %s940_s18 = smov 0  }
   0x9   :  { %s942_s19 = smov 0   ;;  %s944_s20 = smov 0  }
   0xa   :  { %s946_s21 = smov 0   ;;  %s948_s22 = smov 0  }
   0xb LB: > { %1173 = sst [smem:[#allocation11_spill]] %s872_s15  ;;  %s580_s23 = sadd.s32 4294967295, %s900_s22   ;;  %s900_s22 = sphi %s948_s22, %s21_s22   ;;  %s896_s21 = sphi %s946_s21, %s1199_s21   ;;  %s892_s20 = sphi %s944_s20, %s1198_s20   ;;  %s888_s19 = sphi %s942_s19, %s1197_s19   ;;  %s884_s18 = sphi %s940_s18, %s1196_s18   ;;  %s880_s17 = sphi %s938_s17, %s1195_s17   ;;  %s876_s16 = sphi %s936_s16, %s1194_s16   ;;  %s872_s15 = sphi %s934_s15, %s1193_s15  }
   0xc   : > { %s581_s24 = sadd.s32 4294967294, %s900_s22   ;;  %p55_p0 = scmp.ne.s32.totalorder %s876_s16, %s872_s15 }
   0xd   : > { %p978_p1 = scmp.eq.s32.totalorder %s580_s23, 0  ;;  %p982_p2 = scmp.eq.s32.totalorder %s580_s23, 3 }
   0xe   : > { %p150_p3 = scmp.eq.s32.totalorder %s581_s24, 3  ;;  %p582_p5 = scmp.ge.s32.totalorder %s900_s22, 1 }
   0xf   : > { %p988_p4 = por %p978_p1, %p55_p0  ;;  %p157_p7 = scmp.lt.s32.totalorder %s900_s22, 5 }
  0x10   : > { %p993_p6 = por %p150_p3, %p55_p0  ;;  %s902_s30 = smov [#allocation5]  }
  0x11   : > { %s1176_s27 = scalar_select %p988_p4, 1, 0 }
  0x12   : > { %s1177_s28 = scalar_select %p993_p6, 1, 0 }
  0x13   : > { %p998_p8 = pnand %p582_p5, %p157_p7  ;;  %s175_s5 = sshll.u32 %s902_s30, 4  ;;  %s176_s5 = int_to_ptr.vmem [resolvable:$true] %s175_s5 }
  0x14   : > { %1178 = sst [smem:[#allocation12_spill]] %s1177_s28  ;;  %s757_s6 = scalar_lea.vmem %s176_s5, 6144 }
  0x15   : > { %p659_p9 = pneg %p998_p8  ;;  %p758_p12 = scmp.ne.s32.totalorder %s176_s5, %s757_s6 }
  0x16   : > { %p765_p3 = scmp.lt.s32.totalorder %s176_s5, %s176_s5  ;;  %p766_p6 = scmp.lt.s32.totalorder %s757_s6, %s757_s6 }
  0x17   : > { %p660_p10 = pnand %p659_p9, %p978_p1 }
  0x18   : > { %p767_p4 = por %p766_p6, %p765_p3 }
  0x19   : > { %p748_p11 = pneg %p660_p10 }
  0x1b   : > { %p760_p13 = pnand %p758_p12, %p748_p11 }
  0x1d   : > { %p761_p0 = pneg %p760_p13 }
  0x1f   : > { %p768_p5 = pnand %p767_p4, %p761_p0 }
  0x21   : > { %771 = shalt.err (!%p768_p5)
}
  0x22   : > { %s903_s7 = smov 384   ;;  %s904_s8 = smov 24  }
  0x23   : > { %s1180_s3 = sld [smem:[#allocation15_spill]]  ;;  %s30_s11 = sadd.s32 1, %s892_s20 }
  0x24   : > { %p31_p4 = scmp.ge.s32.totalorder %s30_s11, 2  ;;  %s33_s12 = sadd.s32 1, %s896_s21 }
  0x25   : > { %s42_s13 = sadd.s32 1, %s880_s17  ;;  %p49_p6 = scmp.ne.s32.totalorder %s880_s17, %s876_s16 }
  0x26   : > { %s1201_s11 = smov (%p31_p4, %s30_s11), 0  ;;  %s1203_s12 = smov (!%p31_p4, %s33_s12), %s896_s21 }
  0x27   : > { %1181 = sst [smem:[#allocation13_spill]] %s1201_s11  ;;  %s38_s14 = ssub.s32 %s892_s20, %s1201_s11 }
  0x28   : > { %p50_p7 = scmp.eq.s32.totalorder %s900_s22, 0  ;;  %p35_p9 = scmp.ge.s32.totalorder %s1203_s12, 2 }
  0x29   : > { %662 = dma.hbm_to_vmem [thread:$0]  (!%p660_p10), %s1180_s3, 6144, %s176_s5, [#allocation6], %s903_s7, %s903_s7, %s904_s8  }
  0x2a   : > { %p1022_p11 = por %p982_p2, %p49_p6  ;;  %p1026_p10 = por %p50_p7, %p49_p6 }
  0x2b   : > { %p672_p12 = scmp.lt.s32.totalorder %s900_s22, 4  ;;  %s1205_s12 = smov (%p35_p9, %s1203_s12), 0 }
  0x2c   : > { %s1182_s23 = scalar_select %p1022_p11, 1, 0 }
  0x2d   : > { %s189_s30 = sand.u32 1, %s880_s17   ;;  %s586_s5 = sshll.u32 %s896_s21, 1 }
  0x2e   : > { %1183 = sst [smem:[#allocation14_spill]] %s1182_s23  ;;  %s37_s6 = ssub.s32 %s896_s21, %s1205_s12 }
  0x2f   : > { %s39_s7 = sor.u32 %s38_s14, %s37_s6  ;;  %s585_s8 = sshll.u32 %s189_s30, 3 }
  0x30   : > { %p40_p13 = scmp.eq.s32.totalorder %s39_s7, 0  ;;  %s198_s26 = sadd.s32 %s892_s20, %s586_s5 }
  0x31   : > { %s193_s9 = scalar_lea.vmem [#allocation2], %s585_s8  ;;  %s587_s11 = sshll.u32 %s198_s26, 7 }
  0x32   : > { %s202_s10 = sshll.u32 %s193_s9, 4  ;;  %s200_s4 = scalar_lea.hbm %s1159_s0, %s587_s11  ;;  %s203_s10 = int_to_ptr.vmem [resolvable:$true] %s202_s10 }
  0x33   : > { %s1039_s3 = scalar_select %p40_p13, %s880_s17, %s42_s13  }
  0x34   : > { %p1048_p2 = pnand %p672_p12, %p1026_p10  ;;  %s190_s14 = scalar_lea.sflag [#allocation3], %s189_s30 }
  0x35   : > { %s785_s5 = scalar_lea.vmem %s203_s10, 128  ;;  %s905_s13 = smov [#allocation2]  }
  0x36   : > { %p774_p0 = pneg %p1048_p2  ;;  %p786_p3 = scmp.ne.s32.totalorder %s203_s10, %s785_s5 }
  0x37   : > { %s790_s6 = sshll.u32 %s905_s13, 4  ;;  %s791_s6 = int_to_ptr.vmem [resolvable:$false] %s790_s6 }
  0x38   : > { %p788_p5 = pnand %p786_p3, %p774_p0  ;;  %s792_s7 = scalar_lea.vmem %s791_s6, 256 }
  0x39   : > { %p793_p6 = scmp.lt.s32.totalorder %s203_s10, %s791_s6  ;;  %p794_p7 = scmp.lt.s32.totalorder %s792_s7, %s785_s5 }
  0x3a   : > { %p789_p4 = pneg %p788_p5 }
  0x3b   : > { %p795_p9 = por %p794_p7, %p793_p6 }
  0x3d   : > { %p796_p13 = pnand %p795_p9, %p789_p4 }
  0x3f   : > { %799 = shalt.err (!%p796_p13)
}
  0x40   : > { %666 = dma.hbm_to_vmem [thread:$0]  (!%p1048_p2), %s200_s4, 128, %s203_s10, %s190_s14  }
  0x41   : > { %211 = sbr.rel (%p998_p8) target bundleno = 588 (0x24c), region = 36  ;;  %s1059_s15 = sand.u32 (!%p998_p8), 1, %s876_s16  }
  0x42   : > { %s589_s28 = sshll.u32 (!%p998_p8), %s1059_s15, 3  ;;  %s214_s11 = scalar_lea.sflag (!%p998_p8), [#allocation3], %s1059_s15 }
  0x43   : > { %s217_s24 = scalar_lea.vmem (!%p998_p8), [#allocation2], %s589_s28  ;;  %p1186_p10 = scmp.ne.s32.totalorder (!%p998_p8), %s1176_s27, 0 }
  0x46   : > { %859 = dma.done.wait (%p1186_p10), %s214_s11, 128  }
  0x47   : > { %861 = vsyncadd (%p1186_p10), %s214_s11, 4294967168 }
  0x48   : > { %863 = dma.done.wait (%p978_p1), [#allocation6], 6144  }
  0x49   : > { %865 = vsyncadd (%p978_p1), [#allocation6], 4294961152  ;;  %v246_v0 = vld [vmem:[%s217_s24] sm:$0xff]  ;;  %v320_v2 = vld [vmem:[#allocation5 + $0x168] sm:$0xff]  ;;  %v906_v4 = vmov 0.0   ;;  %vm907_vm0 = vmmov 0  }
  0x4a   : > { %249 = vadd.xlane.f32.xlu0 %v246_v0  ;;  %v321_v1 = vld [vmem:[#allocation5 + $0x170] sm:$0xff]  ;;  %v322_v3 = vld [vmem:[#allocation5 + $0x178] sm:$0xff]  ;;  %613 = vmatprep.subr.mxu1 %v906_v4  ;;  %v319_v7 = vld [vmem:[#allocation5 + $0x160] sm:$0xff]  ;;  %s648_s23 = smul.u32 24, %s1059_s15  ;;  %s1188_s7 = sld [smem:[#allocation16_spill]] }
  0x4b   : > { %323 = vmatprep.subr.mxu0 %v321_v1  ;;  %v318_v5 = vld [vmem:[#allocation5 + $0x158] sm:$0xff]  ;;  %v317_v6 = vld [vmem:[#allocation5 + $0x150] sm:$0xff]  ;;  %614 = vmatpush3.msra.mxu1 %v322_v3  ;;  %v315_v8 = vld [vmem:[#allocation5 + $0x140] sm:$0xff]  ;;  %s649_s30 = smul.u32 3, %s884_s18  ;;  %s468_s18 = scalar_lea.sflag [#allocation4], %s1059_s15 }
  0x4c   : > { %324 = vmatpush1.msra.mxu0 %v320_v2  ;;  %615 = vmatprep.subr.mxu1 %v906_v4  ;;  %v314_v9 = vld [vmem:[#allocation5 + $0x138] sm:$0xff]  ;;  %v316_v10 = vld [vmem:[#allocation5 + $0x148] sm:$0xff]  ;;  %v311_v12 = vld [vmem:[#allocation5 + $0x120] sm:$0xff]  ;;  %s650_s8 = smul.u32 6, %s888_s19  ;;  %s245_s10 = scalar_lea.vmem [#allocation7], %s648_s23 }
  0x4d   : > { %325 = vmatprep.subr.mxu0 %v318_v5  ;;  %616 = vmatpush3.msra.mxu1 %v319_v7  ;;  %v312_v11 = vld [vmem:[#allocation5 + $0x128] sm:$0xff]  ;;  %v313_v13 = vld [vmem:[#allocation5 + $0x130] sm:$0xff]  ;;  %v310_v20 = vld [vmem:[#allocation5 + $0x118] sm:$0xff]  ;;  %s484_s14 = sshll.u32 %s245_s10, 4  ;;  %s908_s11 = smov [#allocation7]   ;;  %s1103_s14 = int_to_ptr.vmem [resolvable:$true] %s484_s14 }
  0x4e   : > { %326 = vmatpush1.msra.mxu0 %v317_v6  ;;  %617 = vmatprep.subr.mxu1 %v906_v4  ;;  %v309_v18 = vld [vmem:[#allocation5 + $0x110] sm:$0xff]  ;;  %v308_v19 = vld [vmem:[#allocation5 + $0x108] sm:$0xff]  ;;  %v306_v21 = vld [vmem:[#allocation5 + $0xf8] sm:$0xff]  ;;  %s480_s26 = sadd.s32 %s650_s8, %s649_s30  ;;  %s800_s19 = scalar_lea.vmem %s1103_s14, 384 }
  0x4f   : > { %327 = vmatprep.subr.mxu0 %v315_v8  ;;  %618 = vmatpush3.msra.mxu1 %v316_v10  ;;  %v305_v22 = vld [vmem:[#allocation5 + $0xf0] sm:$0xff]  ;;  %v307_v23 = vld [vmem:[#allocation5 + $0x100] sm:$0xff]  ;;  %v302_v25 = vld [vmem:[#allocation5 + $0xd8] sm:$0xff]  ;;  %s593_s5 = sshll.u32 %s480_s26, 7  ;;  %p801_p1 = scmp.ne.s32.totalorder %s1103_s14, %s800_s19 }
  0x50   : > { %328 = vmatpush1.msra.mxu0 %v314_v9  ;;  %619 = vmatprep.subr.mxu1 %v906_v4  ;;  %v303_v24 = vld [vmem:[#allocation5 + $0xe0] sm:$0xff]  ;;  %v304_v26 = vld [vmem:[#allocation5 + $0xe8] sm:$0xff]  ;;  %v301_v29 = vld [vmem:[#allocation5 + $0xd0] sm:$0xff]  ;;  %s1108_s28 = scalar_lea.hbm %s1188_s7, %s593_s5  ;;  %s804_s24 = sshll.u32 %s908_s11, 4  ;;  %s805_s24 = int_to_ptr.vmem [resolvable:$false] %s804_s24 }
  0x51   : > { %329 = vmatprep.subr.mxu0 %v312_v11  ;;  %620 = vmatpush3.msra.mxu1 %v313_v13  ;;  %v300_v27 = vld [vmem:[#allocation5 + $0xc8] sm:$0xff]  ;;  %v299_v28 = vld [vmem:[#allocation5 + $0xc0] sm:$0xff]  ;;  %v297_v30 = vld [vmem:[#allocation5 + $0xb0] sm:$0xff]  ;;  %p802_p8 = pnand %p801_p1, %p1022_p11  ;;  %s806_s4 = scalar_lea.vmem %s805_s24, 768 }
  0x52   : > { %330 = vmatpush1.msra.mxu0 %v311_v12  ;;  %621 = vmatprep.subr.mxu1 %v906_v4  ;;  %v296_v31 = vld [vmem:[#allocation5 + $0xa8] sm:$0xff]  ;;  %v298_v32 = vld [vmem:[#allocation5 + $0xb8] sm:$0xff]  ;;  %v293_v34 = vld [vmem:[#allocation5 + $0x90] sm:$0xff]  ;;  %p807_p2 = scmp.lt.s32.totalorder %s1103_s14, %s805_s24  ;;  %p808_p0 = scmp.lt.s32.totalorder %s806_s4, %s800_s19 }
  0x53   : > { %387 = vmatprep.mubr.f32.mxu0 %v906_v4  ;;  %331 = vmatprep.subr.mxu0 %v309_v18  ;;  %v294_v33 = vld [vmem:[#allocation5 + $0x98] sm:$0xff]  ;;  %v295_v35 = vld [vmem:[#allocation5 + $0xa0] sm:$0xff]  ;;  %v292_v38 = vld [vmem:[#allocation5 + $0x88] sm:$0xff]  ;;  %p803_p12 = pneg %p802_p8 }
  0x54   : > { %332 = vmatpush1.msra.mxu0 %v308_v19  ;;  %622 = vmatpush3.msra.mxu1 %v310_v20  ;;  %v291_v36 = vld [vmem:[#allocation5 + $0x80] sm:$0xff]  ;;  %v290_v37 = vld [vmem:[#allocation5 + $0x78] sm:$0xff]  ;;  %v288_v39 = vld [vmem:[#allocation5 + $0x68] sm:$0xff]  ;;  %p809_p3 = por %p808_p0, %p807_p2 }
  0x55   : > { %333 = vmatprep.subr.mxu0 %v306_v21  ;;  %623 = vmatprep.subr.mxu1 %v906_v4  ;;  %v287_v40 = vld [vmem:[#allocation5 + $0x60] sm:$0xff]  ;;  %v289_v41 = vld [vmem:[#allocation5 + $0x70] sm:$0xff]  ;;  %v284_v43 = vld [vmem:[#allocation5 + $0x48] sm:$0xff] }
  0x56   : > { %334 = vmatpush1.msra.mxu0 %v305_v22  ;;  %624 = vmatpush3.msra.mxu1 %v307_v23  ;;  %v285_v42 = vld [vmem:[#allocation5 + $0x50] sm:$0xff]  ;;  %v286_v44 = vld [vmem:[#allocation5 + $0x58] sm:$0xff]  ;;  %v283_v47 = vld [vmem:[#allocation5 + $0x40] sm:$0xff]  ;;  %p810_p5 = pnand %p809_p3, %p803_p12 }
  0x57   : > { %335 = vmatprep.subr.mxu0 %v303_v24  ;;  %625 = vmatprep.subr.mxu1 %v906_v4  ;;  %v282_v45 = vld [vmem:[#allocation5 + $0x38] sm:$0xff]  ;;  %v281_v46 = vld [vmem:[#allocation5 + $0x30] sm:$0xff]  ;;  %v279_v48 = vld [vmem:[#allocation5 + $0x20] sm:$0xff] }
  0x58   : > { %336 = vmatpush1.msra.mxu0 %v302_v25  ;;  %626 = vmatpush3.msra.mxu1 %v304_v26  ;;  %v278_v49 = vld [vmem:[#allocation5 + $0x18] sm:$0xff]  ;;  %v280_v50 = vld [vmem:[#allocation5 + $0x28] sm:$0xff]  ;;  %v275_v52 = vld [vmem:[#allocation5] sm:$0xff] }
  0x59   : > { %337 = vmatprep.subr.mxu0 %v300_v27  ;;  %627 = vmatprep.subr.mxu1 %v906_v4  ;;  %v276_v51 = vld [vmem:[#allocation5 + $0x8] sm:$0xff]  ;;  %v277_v53 = vld [vmem:[#allocation5 + $0x10] sm:$0xff] }
  0x5a   : > { %338 = vmatpush1.msra.mxu0 %v299_v28  ;;  %628 = vmatpush3.msra.mxu1 %v301_v29  ;;  %v591_v58 = vld [vmem:[%s1160_s1] ss:$0 sm:$0xff] }
  0x5b   : > { %339 = vmatprep.subr.mxu0 %v297_v30  ;;  %629 = vmatprep.subr.mxu1 %v906_v4  ;;  %v592_v60 = vld [vmem:[%s1161_s2] ss:$0 sm:$0xff] }
  0x5c   : > { %340 = vmatpush1.msra.mxu0 %v296_v31  ;;  %630 = vmatpush3.msra.mxu1 %v298_v32 }
  0x5d   : > { %341 = vmatprep.subr.mxu0 %v294_v33  ;;  %631 = vmatprep.subr.mxu1 %v906_v4 }
  0x5e   : > { %342 = vmatpush1.msra.mxu0 %v293_v34  ;;  %632 = vmatpush3.msra.mxu1 %v295_v35 }
  0x5f   : > { %343 = vmatprep.subr.mxu0 %v291_v36  ;;  %633 = vmatprep.subr.mxu1 %v906_v4 }
  0x60   : > { %344 = vmatpush1.msra.mxu0 %v290_v37  ;;  %634 = vmatpush3.msra.mxu1 %v292_v38 }
  0x61   : > { %345 = vmatprep.subr.mxu0 %v288_v39  ;;  %635 = vmatprep.subr.mxu1 %v906_v4 }
  0x62   : > { %346 = vmatpush1.msra.mxu0 %v287_v40  ;;  %636 = vmatpush3.msra.mxu1 %v289_v41 }
  0x63   : > { %347 = vmatprep.subr.mxu0 %v285_v42  ;;  %637 = vmatprep.subr.mxu1 %v906_v4 }
  0x64   : > { %348 = vmatpush1.msra.mxu0 %v284_v43  ;;  %638 = vmatpush3.msra.mxu1 %v286_v44 }
  0x65   : > { %349 = vmatprep.subr.mxu0 %v282_v45  ;;  %639 = vmatprep.subr.mxu1 %v906_v4 }
  0x66   : > { %350 = vmatpush1.msra.mxu0 %v281_v46  ;;  %640 = vmatpush3.msra.mxu1 %v283_v47 }
  0x67   : > { %351 = vmatprep.subr.mxu0 %v279_v48  ;;  %641 = vmatprep.subr.mxu1 %v906_v4 }
  0x68   : > { %352 = vmatpush1.msra.mxu0 %v278_v49  ;;  %642 = vmatpush3.msra.mxu1 %v280_v50 }
  0x69   : > { %353 = vmatprep.subr.mxu0 %v276_v51  ;;  %643 = vmatprep.subr.mxu1 %v906_v4 }
  0x6a   : > { %354 = vmatpush1.msra.mxu0 %v275_v52  ;;  %644 = vmatpush3.msra.mxu1 %v277_v53 }
  0x6b   : > { %645 = vmatprep.mubr.msk.f32.mxu1 %vm907_vm0, %v906_v4 }
  0xd3   : > { %v250_v14 = vpop.xlane.xlu0 %249 }
  0xd4   : > { %v252_v15 = vmul.f32 0.0078125, %v250_v14 }
  0xd6   : > { %v1077_v16 = vsub.f32 %v246_v0, %v252_v15 }
  0xd8   : > { %v254_v17 = vmul.f32 %v1077_v16, %v1077_v16 }
  0xda   : > { %255 = vadd.xlane.f32.xlu0 %v254_v17 }
 0x163   : > { %v256_v54 = vpop.xlane.xlu0 %255 }
 0x164   : > { %v257_v55 = vmul.f32 0.0078125, %v256_v54 }
 0x166   : > { %v258_v56 = vadd.f32 1e-05, %v257_v55 }
 0x168   : > { %744 = vrsqrt.f32 %v258_v56 }
 0x175   : > { %v745_v57 = vpop.eup %744 }
 0x176   : > { %v260_v59 = vmul.f32 %v745_v57, %v1077_v16 }
 0x178   : > { %v267_v61 = vmul.f32 %v591_v58, %v260_v59 }
 0x17a   : > { %v274_v62 = vadd.f32 %v592_v60, %v267_v61 }
 0x17c   : > { %388 = vmatmul.mubr.f32.vlgmr.msra.gmra.mxu0 %v274_v62  ;;  %646 = vmatmul.mubr.f32.vlgmr.msra.gmra.mxu1 %v274_v62 }
 0x23c   : > { %v389_v63 = vpop.f32.mrf.mxu0  ;;  %v460_v0 = vpop.f32.mrf.mxu1 }
 0x23d   : > { %464 = vst [vmem:[%s245_s10] sm:$0xff] %v389_v63  ;;  %466 = vst [vmem:[%s245_s10 + $0x10] sm:$0xff] %v460_v0 }
 0x23e   : > { %v391_v1 = vpop.f32.mrf.mxu0  ;;  %v647_v2 = vpop.f32.mrf.mxu1 }
 0x23f   : > { %465 = vst [vmem:[%s245_s10 + $0x8] sm:$0xff] %v391_v1 }
 0x240   : > { %813 = shalt.err (!%p810_p5)
}
 0x241   : > { %s814_s25 = scalar_lea.hbm %s1108_s28, 384  ;;  %s818_s29 = scalar_lea.hbm %s1188_s7, 1536 }
 0x242   : > { %p815_p4 = scmp.ne.s32.totalorder %s1108_s28, %s814_s25  ;;  %p819_p9 = scmp.lt.s32.totalorder %s1108_s28, %s1188_s7 }
 0x243   : > { %p820_p13 = scmp.lt.s32.totalorder %s818_s29, %s814_s25 }
 0x244   : > { %p816_p6 = pnand %p815_p4, %p1022_p11 }
 0x245   : > { %p821_p10 = por %p820_p13, %p819_p9 }
 0x246   : > { %p817_p7 = pneg %p816_p6 }
 0x248   : > { %p822_p1 = pnand %p821_p10, %p817_p7 }
 0x24a   : > { %825 = shalt.err (!%p822_p1)
}
 0x24b   : > { %657 = dma.vmem_to_hbm [thread:$0]  (%p1022_p11), %s1103_s14, 384, %s1108_s28, %s468_s18  }
 0x24c PF: > { %s1189_s8 = sld [smem:[#allocation11_spill]]  ;;  %p674_p8 = scmp.ge.s32.totalorder %s900_s22, 2 }
 0x24d   : > { %s1190_s26 = sld [smem:[#allocation12_spill]] }
 0x252   : > { %s496_s10 = sand.u32 1, %s1189_s8  }
 0x253   : > { %p1191_p12 = scmp.ne.s32.totalorder %s1190_s26, 0  ;;  %s497_s5 = scalar_lea.sflag [#allocation4], %s496_s10 }
 0x255   : > { %p668_p2 = pnand %p674_p8, %p1191_p12 }
 0x257   : > { %p669_p0 = pneg %p668_p2 }
 0x259   : > { %867 = dma.done.wait (%p669_p0), %s497_s5, 384  }
 0x25a   : > { %869 = vsyncadd (%p669_p0), %s497_s5, 4294966912  ;;  %s21_s22 = sadd.s32 1, %s900_s22   ;;  %s1192_s9 = sld [smem:[#allocation13_spill]] }
 0x25b   : > { %p18_p3 = scmp.ge.s32.totalorder %s21_s22, 6   ;;  %s1193_s15 = smov %s876_s16 }
 0x25c   : > { %s1194_s16 = smov %s880_s17  ;;  %s1195_s17 = smov %s1039_s3 }
 0x25d   : > { %s1196_s18 = smov %s892_s20  ;;  %s1197_s19 = smov %s896_s21 }
 0x25e   : > { %s1199_s21 = smov %s1205_s12  ;;  %20 = sbr.rel (!%p18_p3) target bundleno = 11 (0xb), region = 85 }
 0x260   : > { %s1198_s20 = smov %s1192_s9 }
 0x263   :  { %502 = vsyncpa [#allocation3], 1 }
 0x264   :  { %504 = vsyncpa [#allocation3 + $0x1], 1 }
 0x265   :  { %505 = vsyncpa [#allocation6], 1 }
 0x266   :  { %506 = vsyncpa [#allocation4], 1 }
 0x267   :  { %508 = vsyncpa [#allocation4 + $0x1], 1 }

</bundles_post_ra>
